<compile_context>
chip_gen: v5e
topology: v5e:2x2
jax: 0.10.0
libtpu: 0.0.40
codegen_flags: <defaults>
</compile_context>

<pallas_src>
import functools

import jax
import jax.numpy as jnp
from jax import lax
from jax.experimental import pallas as pl
from jax.experimental.pallas import tpu as pltpu

LANE = 128       # last-dim (lane) granule
SUBLANE = 8      # second-to-last granule for f32
WEIGHT_DTYPE = jnp.bfloat16


def _round_up(n, m):
    return ((n + m - 1) // m) * m


def _pad_to(a, shape):
    pads = [(0, t - s) for s, t in zip(a.shape, shape)]
    if all(p == (0, 0) for p in pads):
        return a
    return jnp.pad(a, pads)


# ---------------------------------------------------------------------------
# Fused kernel: activation stays in vregs, weights resident in VMEM
# ---------------------------------------------------------------------------

def _fused_mlp_kernel(x_ref, w_in_ref, b_in_ref, w_l_ref, b_l_ref,
                      w_out_ref, b_out_ref, o_ref):
    w_dtype = w_in_ref.dtype

    # Input projection: (bm, IN) @ (IN, H) on the MXU, f32 accumulation.
    act = (jnp.dot(x_ref[...].astype(w_dtype), w_in_ref[...],
                   preferred_element_type=jnp.float32)
           + b_in_ref[...])

    depth = w_l_ref.shape[0]

    def layer_body(i, y):
        h = (jnp.dot(y.astype(w_dtype), w_l_ref[i],
                     preferred_element_type=jnp.float32)
             + b_l_ref[i])
        # norm = Identity, dropout = inference no-op; elementwise stays f32.
        return jnp.maximum(h, 0.0) + y

    if depth <= 4:
        # Small static depth: unrolled at trace time.
        for i in range(depth):
            act = layer_body(i, act)
    else:
        # Large depth: constant-size loop body, dynamic weight indexing.
        act = lax.fori_loop(0, depth, layer_body, act)

    # Output projection.
    o_ref[...] = (jnp.dot(act.astype(w_dtype), w_out_ref[...],
                          preferred_element_type=jnp.float32)
                  + b_out_ref[...]).astype(o_ref.dtype)


# ---------------------------------------------------------------------------
# Parameter init (mirrors torch.nn.Linear defaults) and packing
# ---------------------------------------------------------------------------

def init_linear_params(key, in_dim, out_dim, dtype=jnp.float32):
    kw, kb = jax.random.split(key)
    bound = 1.0 / jnp.sqrt(jnp.asarray(in_dim, dtype))
    w = jax.random.uniform(kw, (out_dim, in_dim), dtype, -bound, bound)
    b = jax.random.uniform(kb, (out_dim,), dtype, -bound, bound)
    # Store transposed weight (in, out) and bias as (1, out).
    return {"w_t": w.T, "b": b.reshape(1, out_dim)}


def init_my_model_params(key, input_dim, hidden_dim, output_dim, depth=1):
    assert depth >= 1, "fused kernel expects at least one residual layer"
    keys = jax.random.split(key, depth + 2)
    return {
        "in_proj": init_linear_params(keys[0], input_dim, hidden_dim),
        "layers": [
            init_linear_params(keys[1 + i], hidden_dim, hidden_dim)
            for i in range(depth)
        ],
        "out_proj": init_linear_params(keys[depth + 1], hidden_dim, output_dim),
    }


def pack_params(params, weight_dtype=WEIGHT_DTYPE):
    """Pad to lane-dense shapes, stack residual layers, cast weights to bf16."""
    in_dim, hidden = params["in_proj"]["w_t"].shape
    out_dim = params["out_proj"]["w_t"].shape[1]
    in_p = _round_up(in_dim, LANE)
    h_p = _round_up(hidden, LANE)
    out_p = _round_up(out_dim, LANE)

    packed = {
        "w_in": _pad_to(params["in_proj"]["w_t"], (in_p, h_p)).astype(weight_dtype),
        "b_in": _pad_to(params["in_proj"]["b"], (1, h_p)).astype(jnp.float32),
        "w_l": jnp.stack([_pad_to(lp["w_t"], (h_p, h_p)).astype(weight_dtype)
                          for lp in params["layers"]]),
        "b_l": jnp.stack([_pad_to(lp["b"], (1, h_p)).astype(jnp.float32)
                          for lp in params["layers"]]),
        "w_out": _pad_to(params["out_proj"]["w_t"], (h_p, out_p)).astype(weight_dtype),
        "b_out": _pad_to(params["out_proj"]["b"], (1, out_p)).astype(jnp.float32),
    }
    return packed, out_dim


# ---------------------------------------------------------------------------
# Forward
# ---------------------------------------------------------------------------

@functools.partial(jax.jit, static_argnames=("batch", "out_dim"))
def _forward_padded(packed, x_p, batch, out_dim):
    b_pad, in_pad = x_p.shape
    depth, h_pad, _ = packed["w_l"].shape
    out_pad = packed["w_out"].shape[1]

    # Batch tiling: one tile at toy sizes; 256-row tiles for large batches
    # (v6e/v7x MXU is 256-wide) sharded across cores via "parallel".
    bm = b_pad if b_pad <= 256 else 256
    grid = (b_pad // bm,)

    wb = jnp.dtype(packed["w_in"].dtype).itemsize
    w_elems = in_pad * h_pad + depth * h_pad * h_pad + h_pad * out_pad
    b_elems = h_pad + depth * h_pad + out_pad

    flops = 2 * b_pad * w_elems
    bytes_accessed = (4 * (x_p.size + b_pad * out_pad)
                      + wb * w_elems + 4 * b_elems)

    # VMEM footprint estimate (x2 for double-buffering) + headroom, capped to
    # stay valid on v7x (64 MiB physical VMEM).
    vmem_needed = 2 * (bm * in_pad * 4 + bm * out_pad * 4
                       + wb * w_elems + 4 * b_elems)
    vmem_limit = int(min(max(vmem_needed + (4 << 20), 16 << 20), 64 << 20))

    out_padded = pl.pallas_call(
        _fused_mlp_kernel,
        out_shape=jax.ShapeDtypeStruct((b_pad, out_pad), x_p.dtype),
        grid=grid,
        in_specs=[
            pl.BlockSpec((bm, in_pad), lambda i: (i, 0)),
            pl.BlockSpec((in_pad, h_pad), lambda i: (0, 0)),
            pl.BlockSpec((1, h_pad), lambda i: (0, 0)),
            pl.BlockSpec((depth, h_pad, h_pad), lambda i: (0, 0, 0)),
            pl.BlockSpec((depth, 1, h_pad), lambda i: (0, 0, 0)),
            pl.BlockSpec((h_pad, out_pad), lambda i: (0, 0)),
            pl.BlockSpec((1, out_pad), lambda i: (0, 0)),
        ],
        out_specs=pl.BlockSpec((bm, out_pad), lambda i: (i, 0)),
        compiler_params=pltpu.CompilerParams(
            dimension_semantics=("parallel",),
            vmem_limit_bytes=vmem_limit),
        cost_estimate=pl.CostEstimate(
            flops=flops, transcendentals=0, bytes_accessed=bytes_accessed),
    )(x_p, packed["w_in"], packed["b_in"], packed["w_l"], packed["b_l"],
      packed["w_out"], packed["b_out"])

    return out_padded[:batch, :out_dim]


def my_model_forward(packed, out_dim, x):
    batch, in_dim = x.shape
    b_pad = _round_up(batch, SUBLANE)
    if b_pad > 256:
        b_pad = _round_up(b_pad, 256)
    in_pad = packed["w_in"].shape[0]
    assert _round_up(in_dim, LANE) == in_pad
    x_p = _pad_to(x, (b_pad, in_pad))
    return _forward_padded(packed, x_p, batch, out_dim)


# ---------------------------------------------------------------------------
# Pure-JAX references
# ---------------------------------------------------------------------------

def my_model_ref(params, x):
    """Module semantics in full f32."""
    x = x @ params["in_proj"]["w_t"] + params["in_proj"]["b"]
    for lp in params["layers"]:
        h = jnp.maximum(x @ lp["w_t"] + lp["b"], 0.0)
        x = h + x
    x = x @ params["out_proj"]["w_t"] + params["out_proj"]["b"]
    return x


def my_model_ref_quantized(params, x, wdt=WEIGHT_DTYPE):
    """Mirrors the kernel's bf16 dot operands / f32 accumulation exactly."""
    def q(a):
        return a.astype(wdt).astype(jnp.float32)
    x = q(x) @ q(params["in_proj"]["w_t"]) + params["in_proj"]["b"]
    for lp in params["layers"]:
        h = jnp.maximum(q(x) @ q(lp["w_t"]) + lp["b"], 0.0)
        x = h + x
    x = q(x) @ q(params["out_proj"]["w_t"]) + params["out_proj"]["b"]
    return x


if __name__ == "__main__":
    batch = 8
    input_dim = 32
    hidden_dim = 32
    output_dim = 16
    depth = 2

    key = jax.random.PRNGKey(0)
    k_params, k_x = jax.random.split(key)

    params = init_my_model_params(
        k_params, input_dim, hidden_dim, output_dim, depth=depth)
    packed, out_dim = pack_params(params)

    x = jax.random.normal(k_x, (batch, input_dim), dtype=jnp.float32)

    out = my_model_forward(packed, out_dim, x)
    out = jax.block_until_ready(out)
    assert out.shape == (batch, output_dim)

    # Structural check: matches the bf16-operand / f32-accum reference tightly.
    ref_q = my_model_ref_quantized(params, x)
    assert jnp.allclose(out, ref_q, atol=1e-3, rtol=1e-3), "mismatch vs quantized ref"

    # Semantic check: close to the full-f32 module output (bf16 weight quantization).
    ref = my_model_ref(params, x)
    assert jnp.allclose(out, ref, atol=5e-2, rtol=5e-2), "mismatch vs f32 reference"

    print("KERNEL_OK")
</pallas_src>

<mosaic_0001>
module attributes {stable_mosaic.version = 11 : i64} {
  func.func @_fused_mlp_kernel(%arg0: i32, %arg1: memref<8x128xf32, #tpu.memory_space<vmem>>, %arg2: memref<128x128xbf16, #tpu.memory_space<vmem>>, %arg3: memref<1x128xf32, #tpu.memory_space<vmem>>, %arg4: memref<2x128x128xbf16, #tpu.memory_space<vmem>>, %arg5: memref<2x1x128xf32, #tpu.memory_space<vmem>>, %arg6: memref<128x128xbf16, #tpu.memory_space<vmem>>, %arg7: memref<1x128xf32, #tpu.memory_space<vmem>>, %arg8: memref<8x128xf32, #tpu.memory_space<vmem>>) attributes {dimension_semantics = [#tpu.dimension_semantics<parallel>], iteration_bounds = array<i64: 1>, scalar_prefetch = 0 : i64, scratch_operands = 0 : i64, tpu.core_type = #tpu.core_type<tc>, window_params = [{transform_indices = @transform_0, window_bounds = array<i64: 8, 128>}, {pipeline_mode = #tpu.pipeline_mode<synchronous>, transform_indices = @transform_1, window_bounds = array<i64: 128, 128>}, {pipeline_mode = #tpu.pipeline_mode<synchronous>, transform_indices = @transform_2, window_bounds = array<i64: 1, 128>}, {pipeline_mode = #tpu.pipeline_mode<synchronous>, transform_indices = @transform_3, window_bounds = array<i64: 2, 128, 128>}, {pipeline_mode = #tpu.pipeline_mode<synchronous>, transform_indices = @transform_4, window_bounds = array<i64: 2, 1, 128>}, {pipeline_mode = #tpu.pipeline_mode<synchronous>, transform_indices = @transform_5, window_bounds = array<i64: 128, 128>}, {pipeline_mode = #tpu.pipeline_mode<synchronous>, transform_indices = @transform_6, window_bounds = array<i64: 1, 128>}, {transform_indices = @transform_7, window_bounds = array<i64: 8, 128>}]} {
    %c0 = arith.constant 0 : index
    %c0_0 = arith.constant 0 : index
    %0 = vector.load %arg1[%c0, %c0_0] : memref<8x128xf32, #tpu.memory_space<vmem>>, vector<8x128xf32>
    %1 = arith.truncf %0 : vector<8x128xf32> to vector<8x128xbf16>
    %c0_1 = arith.constant 0 : index
    %c0_2 = arith.constant 0 : index
    %2 = vector.load %arg2[%c0_1, %c0_2] : memref<128x128xbf16, #tpu.memory_space<vmem>>, vector<128x128xbf16>
    %cst = arith.constant dense<0.000000e+00> : vector<8x128xf32>
    %3 = tpu.matmul %1, %2, %cst {dimension_numbers = #tpu.dot_dimension_numbers<[1], [0], [0], [1], [0, 0, 1, 1], [], []>} : vector<8x128xbf16>, vector<128x128xbf16>, vector<8x128xf32> -> vector<8x128xf32>
    %c0_3 = arith.constant 0 : index
    %c0_4 = arith.constant 0 : index
    %4 = vector.load %arg3[%c0_3, %c0_4] : memref<1x128xf32, #tpu.memory_space<vmem>>, vector<1x128xf32>
    %5 = vector.broadcast %4 : vector<1x128xf32> to vector<8x128xf32>
    %6 = arith.addf %3, %5 : vector<8x128xf32>
    %7 = arith.truncf %6 : vector<8x128xf32> to vector<8x128xbf16>
    %c0_5 = arith.constant 0 : index
    %c0_6 = arith.constant 0 : index
    %c0_7 = arith.constant 0 : index
    %8 = vector.load %arg4[%c0_5, %c0_6, %c0_7] : memref<2x128x128xbf16, #tpu.memory_space<vmem>>, vector<1x128x128xbf16>
    %9 = vector.shape_cast %8 : vector<1x128x128xbf16> to vector<128x128xbf16>
    %cst_8 = arith.constant dense<0.000000e+00> : vector<8x128xf32>
    %10 = tpu.matmul %7, %9, %cst_8 {dimension_numbers = #tpu.dot_dimension_numbers<[1], [0], [0], [1], [0, 0, 1, 1], [], []>} : vector<8x128xbf16>, vector<128x128xbf16>, vector<8x128xf32> -> vector<8x128xf32>
    %c0_9 = arith.constant 0 : index
    %c0_10 = arith.constant 0 : index
    %c0_11 = arith.constant 0 : index
    %11 = vector.load %arg5[%c0_9, %c0_10, %c0_11] : memref<2x1x128xf32, #tpu.memory_space<vmem>>, vector<1x1x128xf32>
    %12 = vector.shape_cast %11 : vector<1x1x128xf32> to vector<1x128xf32>
    %13 = vector.broadcast %12 : vector<1x128xf32> to vector<8x128xf32>
    %14 = arith.addf %10, %13 : vector<8x128xf32>
    %cst_12 = arith.constant 0.000000e+00 : f32
    %15 = vector.broadcast %cst_12 : f32 to vector<8x128xf32>
    %16 = arith.maximumf %14, %15 : vector<8x128xf32>
    %17 = arith.addf %16, %6 : vector<8x128xf32>
    %18 = arith.truncf %17 : vector<8x128xf32> to vector<8x128xbf16>
    %c1 = arith.constant 1 : index
    %c0_13 = arith.constant 0 : index
    %c0_14 = arith.constant 0 : index
    %19 = vector.load %arg4[%c1, %c0_13, %c0_14] : memref<2x128x128xbf16, #tpu.memory_space<vmem>>, vector<1x128x128xbf16>
    %20 = vector.shape_cast %19 : vector<1x128x128xbf16> to vector<128x128xbf16>
    %cst_15 = arith.constant dense<0.000000e+00> : vector<8x128xf32>
    %21 = tpu.matmul %18, %20, %cst_15 {dimension_numbers = #tpu.dot_dimension_numbers<[1], [0], [0], [1], [0, 0, 1, 1], [], []>} : vector<8x128xbf16>, vector<128x128xbf16>, vector<8x128xf32> -> vector<8x128xf32>
    %c1_16 = arith.constant 1 : index
    %c0_17 = arith.constant 0 : index
    %c0_18 = arith.constant 0 : index
    %22 = vector.load %arg5[%c1_16, %c0_17, %c0_18] : memref<2x1x128xf32, #tpu.memory_space<vmem>>, vector<1x1x128xf32>
    %23 = vector.shape_cast %22 : vector<1x1x128xf32> to vector<1x128xf32>
    %24 = vector.broadcast %23 : vector<1x128xf32> to vector<8x128xf32>
    %25 = arith.addf %21, %24 : vector<8x128xf32>
    %cst_19 = arith.constant 0.000000e+00 : f32
    %26 = vector.broadcast %cst_19 : f32 to vector<8x128xf32>
    %27 = arith.maximumf %25, %26 : vector<8x128xf32>
    %28 = arith.addf %27, %17 : vector<8x128xf32>
    %29 = arith.truncf %28 : vector<8x128xf32> to vector<8x128xbf16>
    %c0_20 = arith.constant 0 : index
    %c0_21 = arith.constant 0 : index
    %30 = vector.load %arg6[%c0_20, %c0_21] : memref<128x128xbf16, #tpu.memory_space<vmem>>, vector<128x128xbf16>
    %cst_22 = arith.constant dense<0.000000e+00> : vector<8x128xf32>
    %31 = tpu.matmul %29, %30, %cst_22 {dimension_numbers = #tpu.dot_dimension_numbers<[1], [0], [0], [1], [0, 0, 1, 1], [], []>} : vector<8x128xbf16>, vector<128x128xbf16>, vector<8x128xf32> -> vector<8x128xf32>
    %c0_23 = arith.constant 0 : index
    %c0_24 = arith.constant 0 : index
    %32 = vector.load %arg7[%c0_23, %c0_24] : memref<1x128xf32, #tpu.memory_space<vmem>>, vector<1x128xf32>
    %33 = vector.broadcast %32 : vector<1x128xf32> to vector<8x128xf32>
    %34 = arith.addf %31, %33 : vector<8x128xf32>
    %c0_25 = arith.constant 0 : index
    %c0_26 = arith.constant 0 : index
    %35 = vector.load %arg8[%c0_25, %c0_26] : memref<8x128xf32, #tpu.memory_space<vmem>>, vector<8x128xf32>
    tpu.vector_store %arg8[%c0_25, %c0_26], %34 {strides = array<i32>} : memref<8x128xf32, #tpu.memory_space<vmem>>, vector<8x128xf32>,
    return
  }
  func.func @transform_0(%arg0: i32) -> (i32, i32) {
    %c0_i32 = arith.constant 0 : i32
    %c0_i32_0 = arith.constant 0 : i32
    return %arg0, %c0_i32 : i32, i32
  }
  func.func @transform_1(%arg0: i32) -> (i32, i32) {
    %c0_i32 = arith.constant 0 : i32
    %c0_i32_0 = arith.constant 0 : i32
    %c0_i32_1 = arith.constant 0 : i32
    return %c0_i32, %c0_i32_0 : i32, i32
  }
  func.func @transform_2(%arg0: i32) -> (i32, i32) {
    %c0_i32 = arith.constant 0 : i32
    %c0_i32_0 = arith.constant 0 : i32
    %c0_i32_1 = arith.constant 0 : i32
    return %c0_i32, %c0_i32_0 : i32, i32
  }
  func.func @transform_3(%arg0: i32) -> (i32, i32, i32) {
    %c0_i32 = arith.constant 0 : i32
    %c0_i32_0 = arith.constant 0 : i32
    %c0_i32_1 = arith.constant 0 : i32
    %c0_i32_2 = arith.constant 0 : i32
    return %c0_i32, %c0_i32_0, %c0_i32_1 : i32, i32, i32
  }
  func.func @transform_4(%arg0: i32) -> (i32, i32, i32) {
    %c0_i32 = arith.constant 0 : i32
    %c0_i32_0 = arith.constant 0 : i32
    %c0_i32_1 = arith.constant 0 : i32
    %c0_i32_2 = arith.constant 0 : i32
    return %c0_i32, %c0_i32_0, %c0_i32_1 : i32, i32, i32
  }
  func.func @transform_5(%arg0: i32) -> (i32, i32) {
    %c0_i32 = arith.constant 0 : i32
    %c0_i32_0 = arith.constant 0 : i32
    %c0_i32_1 = arith.constant 0 : i32
    return %c0_i32, %c0_i32_0 : i32, i32
  }
  func.func @transform_6(%arg0: i32) -> (i32, i32) {
    %c0_i32 = arith.constant 0 : i32
    %c0_i32_0 = arith.constant 0 : i32
    %c0_i32_1 = arith.constant 0 : i32
    return %c0_i32, %c0_i32_0 : i32, i32
  }
  func.func @transform_7(%arg0: i32) -> (i32, i32) {
    %c0_i32 = arith.constant 0 : i32
    %c0_i32_0 = arith.constant 0 : i32
    return %arg0, %c0_i32 : i32, i32
  }
}

</mosaic_0001>

<bundles_post_ra>
// kernel: _forward_padded.1
= control target key start
LH: loop header
LB: loop body
LE: loop exit
PB: predicated region body
PF: predicated region fallthrough
CT: control target
= control target key end

     0   :  { %12 = vsyncpa [#allocation3], 0  ;;  %s910_s0 = inlined_call_operand.hbm [shape: f32[8,128], index: 0, kind: input, shape index: {}]   ;;  %s911_s1 = inlined_call_operand.hbm [shape: bf16[128,128], index: 1, kind: input, shape index: {}]   ;;  %s912_s2 = inlined_call_operand.hbm [shape: f32[1,128], index: 2, kind: input, shape index: {}]   ;;  %s913_s3 = inlined_call_operand.hbm [shape: bf16[2,128,128], index: 3, kind: input, shape index: {}]   ;;  %s914_s4 = inlined_call_operand.hbm [shape: f32[2,1,128], index: 4, kind: input, shape index: {}]   ;;  %s915_s5 = inlined_call_operand.hbm [shape: bf16[128,128], index: 5, kind: input, shape index: {}]   ;;  %s916_s6 = inlined_call_operand.vmem [shape: f32[1,128], index: 6, kind: input, shape index: {}]   ;;  %s917_s7 = inlined_call_operand.hbm [shape: f32[8,128], index: 7, kind: output, shape index: {}]  }
   0x1   :  { %13 = vsyncpa [#allocation6], 0 }
   0x2   :  { %14 = vsyncpa [#allocation9], 0 }
   0x3   :  { %15 = vsyncpa [#allocation12], 0  ;;  %s32_s26 = sshll.u32 %s911_s1, 4  ;;  %s33_s26 = int_to_ptr.hbm [resolvable:$true] %s32_s26 }
   0x4   :  { %16 = vsyncpa [#allocation4], 0  ;;  %s826_s27 = smov [#allocation5]   ;;  %s56_s8 = sshll.u32 %s913_s3, 4  ;;  %s57_s8 = int_to_ptr.hbm [resolvable:$true] %s56_s8 }
   0x5   :  { %s34_s28 = sshll.u32 %s826_s27, 4  ;;  %s827_s9 = smov 64   ;;  %s35_s28 = int_to_ptr.vmem [resolvable:$true] %s34_s28 }
   0x6   :  { %s828_s10 = smov 4   ;;  %s829_s11 = smov [#allocation8]  }
   0x7   :  { %40 = dma.hbm_to_vmem [thread:$0]  %s33_s26, 1024, %s35_s28, [#allocation6], %s827_s9, %s827_s9, %s828_s10  }
   0x8   :  { %s58_s12 = sshll.u32 %s829_s11, 4  ;;  %s22_s14 = sshll.u32 %s910_s0, 4  ;;  %s59_s12 = int_to_ptr.vmem [resolvable:$true] %s58_s12  ;;  %s23_s14 = int_to_ptr.hbm [resolvable:$true] %s22_s14 }
   0x9   :  { %64 = dma.hbm_to_vmem [thread:$0]  %s57_s8, 2048, %s59_s12, [#allocation9], %s827_s9, %s827_s9, %s828_s10  }
   0xa   :  { %s46_s16 = sshll.u32 %s912_s2, 4  ;;  %s830_s17 = smov [#allocation2]   ;;  %s47_s16 = int_to_ptr.hbm [resolvable:$true] %s46_s16 }
   0xb   :  { %s24_s18 = sshll.u32 %s830_s17, 4  ;;  %s831_s19 = smov [#allocation7]   ;;  %s25_s18 = int_to_ptr.vmem [resolvable:$true] %s24_s18 }
   0xc   :  { %27 = dma.hbm_to_vmem [thread:$0]  %s23_s14, 128, %s25_s18, [#allocation3]  }
   0xd   :  { %s48_s20 = sshll.u32 %s831_s19, 4  ;;  %s69_s0 = sshll.u32 %s914_s4, 4  ;;  %s49_s20 = int_to_ptr.vmem [resolvable:$true] %s48_s20  ;;  %s70_s0 = int_to_ptr.hbm [resolvable:$true] %s69_s0 }
   0xe   :  { %51 = dma.hbm_to_vmem [thread:$0]  %s47_s16, 16, %s49_s20, [#allocation6]  }
   0xf   :  { %s832_s23 = smov [#allocation10]   ;;  %s82_s2 = sshll.u32 %s915_s5, 4  ;;  %s83_s2 = int_to_ptr.hbm [resolvable:$true] %s82_s2 }
  0x10   :  { %s71_s24 = sshll.u32 %s832_s23, 4  ;;  %s833_s27 = smov 16   ;;  %s72_s24 = int_to_ptr.vmem [resolvable:$true] %s71_s24 }
  0x11   :  { %s834_s28 = smov 1   ;;  %s835_s29 = smov [#allocation11]  }
  0x12   :  { %77 = dma.hbm_to_vmem [thread:$0]  %s70_s0, 32, %s72_s24, [#allocation9], %s833_s27, %s833_s27, %s834_s28  }
  0x13   :  { %s84_s30 = sshll.u32 %s835_s29, 4  ;;  %s85_s30 = int_to_ptr.vmem [resolvable:$true] %s84_s30 }
  0x14   :  { %90 = dma.hbm_to_vmem [thread:$0]  %s83_s2, 1024, %s85_s30, [#allocation12], %s827_s9, %s827_s9, %s828_s10  }
  0x15   :  { %816 = dma.done.wait [#allocation3], 128  }
  0x16   :  { %817 = vsyncadd [#allocation3], 4294967168 }
  0x17   :  { %818 = dma.done.wait [#allocation6], 1040  }
  0x18   :  { %819 = vsyncadd [#allocation6], 4294966256 }
  0x19   :  { %820 = dma.done.wait [#allocation9], 2080  }
  0x1a   :  { %821 = vsyncadd [#allocation9], 4294965216 }
  0x1b   :  { %822 = dma.done.wait [#allocation12], 1024  }
  0x1c   :  { %823 = vsyncadd [#allocation12], 4294966272  ;;  %v608_v0 = vld [vmem:[#allocation5 + $0x38] sm:$0xff]  ;;  %v607_v1 = vld [vmem:[#allocation5 + $0x30] sm:$0xff]  ;;  %s836_s8 = smov [#allocation13]   ;;  %s460_s12 = sshll.u32 %s917_s7, 4  ;;  %s461_s12 = int_to_ptr.hbm [resolvable:$true] %s460_s12 }
  0x1d   :  { %187 = vmatpush.bf16.msra.mxu0 %v608_v0  ;;  %v616_v2 = vld [vmem:[#allocation8 + $0x38] sm:$0xff]  ;;  %v606_v3 = vld [vmem:[#allocation5 + $0x28] sm:$0xff]  ;;  %v615_v4 = vld [vmem:[#allocation8 + $0x30] sm:$0xff]  ;;  %s458_s9 = sshll.u32 %s836_s8, 4  ;;  %s459_s9 = int_to_ptr.vmem [resolvable:$true] %s458_s9 }
  0x1e   :  { %269 = vmatpush.bf16.msra.mxu1 %v616_v2  ;;  %v614_v5 = vld [vmem:[#allocation8 + $0x28] sm:$0xff]  ;;  %v605_v6 = vld [vmem:[#allocation5 + $0x20] sm:$0xff]  ;;  %v604_v8 = vld [vmem:[#allocation5 + $0x18] sm:$0xff] }
  0x1f   :  { %v613_v7 = vld [vmem:[#allocation8 + $0x20] sm:$0xff]  ;;  %v612_v9 = vld [vmem:[#allocation8 + $0x18] sm:$0xff]  ;;  %v603_v10 = vld [vmem:[#allocation5 + $0x10] sm:$0xff] }
  0x20   :  { %v611_v11 = vld [vmem:[#allocation8 + $0x10] sm:$0xff]  ;;  %v602_v12 = vld [vmem:[#allocation5 + $0x8] sm:$0xff]  ;;  %v601_v14 = vld [vmem:[#allocation5] sm:$0xff] }
  0x21   :  { %188 = vmatpush.bf16.msra.mxu0 %v607_v1  ;;  %v610_v13 = vld [vmem:[#allocation8 + $0x8] sm:$0xff]  ;;  %v117_v15 = vld [vmem:[#allocation2] sm:$0xff]  ;;  %v609_v17 = vld [vmem:[#allocation8] sm:$0xff] }
  0x22   :  { %270 = vmatpush.bf16.msra.mxu1 %v615_v4  ;;  %v118_v16 = vpack.c.bf16 %v117_v15, %v117_v15  ;;  %v624_v18 = vld [vmem:[#allocation8 + $0x78] sm:$0xff]  ;;  %v623_v19 = vld [vmem:[#allocation8 + $0x70] sm:$0xff]  ;;  %v622_v20 = vld [vmem:[#allocation8 + $0x68] sm:$0xff] }
  0x23   :  { %355 = vmatpush.bf16.msra.mxu2 %v624_v18  ;;  %v621_v21 = vld [vmem:[#allocation8 + $0x60] sm:$0xff]  ;;  %v620_v22 = vld [vmem:[#allocation8 + $0x58] sm:$0xff]  ;;  %v619_v23 = vld [vmem:[#allocation8 + $0x50] sm:$0xff] }
  0x24   :  { %v644_v24 = vld [vmem:[#allocation7] ss:$0 sm:$0xff]  ;;  %v618_v29 = vld [vmem:[#allocation8 + $0x48] sm:$0xff]  ;;  %v617_v30 = vld [vmem:[#allocation8 + $0x40] sm:$0xff] }
  0x25   :  { %189 = vmatpush.bf16.msra.mxu0 %v606_v3  ;;  %v632_v31 = vld [vmem:[#allocation11 + $0x38] sm:$0xff]  ;;  %v631_v32 = vld [vmem:[#allocation11 + $0x30] sm:$0xff]  ;;  %v630_v33 = vld [vmem:[#allocation11 + $0x28] sm:$0xff] }
  0x26   :  { %271 = vmatpush.bf16.msra.mxu1 %v614_v5  ;;  %439 = vmatpush.bf16.msra.mxu3 %v632_v31  ;;  %v629_v34 = vld [vmem:[#allocation11 + $0x20] sm:$0xff]  ;;  %v628_v35 = vld [vmem:[#allocation11 + $0x18] sm:$0xff]  ;;  %v627_v36 = vld [vmem:[#allocation11 + $0x10] sm:$0xff] }
  0x27   :  { %356 = vmatpush.bf16.msra.mxu2 %v623_v19  ;;  %v645_v37 = vld [vmem:[#allocation10] ss:$0 sm:$0xff]  ;;  %v626_v44 = vld [vmem:[#allocation11 + $0x8] sm:$0xff]  ;;  %v625_v45 = vld [vmem:[#allocation11] sm:$0xff] }
  0x28   :  { %v646_v46 = vld [vmem:[#allocation10 + $0x1] ss:$0 sm:$0xff]  ;;  %v647_v53 = vld [vmem:[%s916_s6] ss:$0 sm:$0xff] }
  0x29   :  { %190 = vmatpush.bf16.msra.mxu0 %v605_v6 }
  0x2a   :  { %272 = vmatpush.bf16.msra.mxu1 %v613_v7  ;;  %440 = vmatpush.bf16.msra.mxu3 %v631_v32 }
  0x2b   :  { %357 = vmatpush.bf16.msra.mxu2 %v622_v20 }
  0x2d   :  { %191 = vmatpush.bf16.msra.mxu0 %v604_v8 }
  0x2e   :  { %273 = vmatpush.bf16.msra.mxu1 %v612_v9  ;;  %441 = vmatpush.bf16.msra.mxu3 %v630_v33 }
  0x2f   :  { %358 = vmatpush.bf16.msra.mxu2 %v621_v21 }
  0x31   :  { %192 = vmatpush.bf16.msra.mxu0 %v603_v10 }
  0x32   :  { %274 = vmatpush.bf16.msra.mxu1 %v611_v11  ;;  %442 = vmatpush.bf16.msra.mxu3 %v629_v34 }
  0x33   :  { %359 = vmatpush.bf16.msra.mxu2 %v620_v22 }
  0x35   :  { %193 = vmatpush.bf16.msra.mxu0 %v602_v12 }
  0x36   :  { %275 = vmatpush.bf16.msra.mxu1 %v610_v13  ;;  %443 = vmatpush.bf16.msra.mxu3 %v628_v35 }
  0x37   :  { %360 = vmatpush.bf16.msra.mxu2 %v619_v23 }
  0x39   :  { %194 = vmatpush.bf16.msra.mxu0 %v601_v14 }
  0x3a   :  { %276 = vmatpush.bf16.msra.mxu1 %v609_v17  ;;  %444 = vmatpush.bf16.msra.mxu3 %v627_v36 }
  0x3b   :  { %361 = vmatpush.bf16.msra.mxu2 %v618_v29 }
  0x3c   :  { %195 = vmatmul.bf16.vlgmr.msra.gmra.mxu0 %v118_v16 }
  0x3e   :  { %445 = vmatpush.bf16.msra.mxu3 %v626_v44 }
  0x3f   :  { %362 = vmatpush.bf16.msra.mxu2 %v617_v30 }
  0x42   :  { %446 = vmatpush.bf16.msra.mxu3 %v625_v45 }
  0xb9   :  { %v196_v25 = vpop.f32.mrf.mxu0 }
  0xba   :  { %v197_v26 = vadd.f32 %v644_v24, %v196_v25 }
  0xbc   :  { %v200_v27 = vpack.c.bf16 %v197_v26, %v197_v26 }
  0xbe   :  { %277 = vmatmul.bf16.vlgmr.msra.gmra.mxu1 %v200_v27 }
  0xc1   :  { %v198_v28 = vpop.f32.mrf.mxu0 }
 0x13b   :  { %v278_v38 = vpop.f32.mrf.mxu1 }
 0x13c   :  { %v279_v39 = vadd.f32 %v645_v37, %v278_v38 }
 0x13e   :  { %v282_v40 = vmax.f32 %v279_v39, 0.0 }
 0x140   :  { %v283_v41 = vadd.f32 %v282_v40, %v197_v26 }
 0x142   :  { %v284_v42 = vpack.c.bf16 %v283_v41, %v283_v41 }
 0x143   :  { %v280_v43 = vpop.f32.mrf.mxu1 }
 0x144   :  { %363 = vmatmul.bf16.vlgmr.msra.gmra.mxu2 %v284_v42 }
 0x1c7   :  { %v364_v47 = vpop.f32.mrf.mxu2 }
 0x1c8   :  { %v365_v48 = vadd.f32 %v646_v46, %v364_v47 }
 0x1ca   :  { %v368_v49 = vmax.f32 %v365_v48, 0.0 }
 0x1cc   :  { %v369_v50 = vadd.f32 %v368_v49, %v283_v41 }
 0x1ce   :  { %v370_v51 = vpack.c.bf16 %v369_v50, %v369_v50 }
 0x1cf   :  { %v366_v52 = vpop.f32.mrf.mxu2 }
 0x1d0   :  { %447 = vmatmul.bf16.vlgmr.msra.gmra.mxu3 %v370_v51 }
 0x253   :  { %v448_v54 = vpop.f32.mrf.mxu3 }
 0x254   :  { %v449_v55 = vadd.f32 %v647_v53, %v448_v54 }
 0x256   :  { %452 = vst [vmem:[#allocation13] sm:$0xff] %v449_v55 }
 0x257   :  { %463 = dma.vmem_to_hbm [thread:$0]  %s459_s9, 128, %s461_s12, [#allocation4]  }
 0x25b   :  { %v450_v56 = vpop.f32.mrf.mxu3 }
 0x25c   :  { %824 = dma.done.wait [#allocation4], 128  }
 0x25d   :  { %825 = vsyncadd [#allocation4], 4294967168 }
 0x25e   :  { %468 = vsyncpa [#allocation3], 1 }
 0x25f   :  { %469 = vsyncpa [#allocation6], 1 }
 0x260   :  { %470 = vsyncpa [#allocation9], 1 }
 0x261   :  { %471 = vsyncpa [#allocation12], 1 }
 0x262   :  { %472 = vsyncpa [#allocation4], 1 }

</bundles_post_ra>
